<compile_context>
chip_gen: v7x
topology: tpu7x:2x2x1
jax: 0.10.0
libtpu: 0.0.40
codegen_flags: <defaults>
</compile_context>

<pallas_src>
import jax
import jax.numpy as jnp
from jax.experimental import pallas as pl
from jax.experimental.pallas import tpu as pltpu


def _addcoords_kernel(x_ref, coords_ref, o_ref):
    # x_ref:      (1, C, TS)        input feature tile (one batch element, lane-dense spatial tile)
    # coords_ref: (extra, TS)       precomputed xx/yy(/rr) channels for this spatial tile
    # o_ref:      (1, C+extra, TS)  output tile
    C = x_ref.shape[1]
    # Pass-through of the original feature channels (one contiguous, lane-dense store).
    o_ref[0, :C, :] = x_ref[0, :, :]
    # Coordinate channels: single contiguous store of all extra channels.
    o_ref[0, C:, :] = coords_ref[...]


def _make_coords(H, W, with_r, dtype):
    """Precompute the (extra, H*W) coordinate channels once (f32 math, cast once at the end)."""
    if H < 2:
        xx_1d = jnp.full((H,), 0.5, jnp.float32)
    else:
        xx_1d = jnp.arange(H, dtype=jnp.float32) / jnp.float32(H - 1)
    if W < 2:
        yy_1d = jnp.full((W,), 0.5, jnp.float32)
    else:
        yy_1d = jnp.arange(W, dtype=jnp.float32) / jnp.float32(W - 1)
    xx = jnp.broadcast_to((xx_1d * 2.0 - 1.0)[:, None], (H, W))
    yy = jnp.broadcast_to((yy_1d * 2.0 - 1.0)[None, :], (H, W))
    chans = [xx, yy]
    if with_r:
        rr = jnp.sqrt((xx - 0.5) ** 2 + (yy - 0.5) ** 2)
        chans.append(rr)
    extra = len(chans)
    return jnp.stack(chans, axis=0).reshape(extra, H * W).astype(dtype)


def _pick_spatial_tile(hw, per_elem_bytes, budget_bytes=4 << 20):
    """Largest multiple of 128 that evenly divides hw and keeps one block-set <= budget."""
    if hw % 128 != 0:
        return hw  # full-extent last dim is always a legal block shape
    best = 128
    t = 128
    while t <= hw:
        if hw % t == 0 and t * per_elem_bytes <= budget_bytes:
            best = t
        t += 128
    return best


def add_coords(x, with_r=False):
    """Pallas implementation of AddCoords.forward (NCHW)."""
    B, C, H, W = x.shape
    extra = 3 if with_r else 2
    out_shape4 = (B, C + extra, H, W)

    if x.size == 0:
        # PyTorch empty-tensor fast path (_NewEmptyTensorOp): shape/dtype-only result.
        # TODO(synk): PyTorch returns an *uninitialized* tensor (and prints a log line);
        # we return zeros, which is a deterministic stand-in with identical shape/dtype.
        return jnp.zeros(out_shape4, x.dtype)

    HW = H * W
    itemsize = jnp.dtype(x.dtype).itemsize
    # Bytes per spatial element across all blocks (x in + coords in + out).
    per_elem_bytes = (2 * C + 2 * extra) * itemsize
    TS = _pick_spatial_tile(HW, per_elem_bytes)
    n_spatial = HW // TS  # TS divides HW exactly (or TS == HW)

    coords = _make_coords(H, W, with_r, x.dtype)   # (extra, HW), computed once
    x2 = x.reshape(B, C, HW)                       # lane-dense: H*W on the lane axis

    # Scoped-VMEM budget derived from the actual block sizes (double-buffered in+out),
    # clamped for v7x's smaller per-core VMEM.
    blk_bytes = (C + extra + (C + extra)) * TS * itemsize
    vmem_limit = int(min(max(4 * blk_bytes + (4 << 20), 16 << 20), 48 << 20))

    out2 = pl.pallas_call(
        _addcoords_kernel,
        out_shape=jax.ShapeDtypeStruct((B, C + extra, HW), x.dtype),
        grid_spec=pltpu.PrefetchScalarGridSpec(
            num_scalar_prefetch=0,
            grid=(B, n_spatial),
            in_specs=[
                pl.BlockSpec((1, C, TS), lambda b, s: (b, 0, s)),
                pl.BlockSpec((extra, TS), lambda b, s: (0, s)),
            ],
            out_specs=pl.BlockSpec((1, C + extra, TS), lambda b, s: (b, 0, s)),
        ),
        compiler_params=pltpu.CompilerParams(
            dimension_semantics=("parallel", "parallel"),
            vmem_limit_bytes=vmem_limit,
        ),
    )(x2, coords)

    return out2.reshape(out_shape4)


def _reference(x, with_r=False):
    """Pure-JAX reference mirroring the PyTorch semantics (f32 coord math, cast at the end)."""
    B, C, H, W = x.shape
    coords = _make_coords(H, W, with_r, x.dtype)  # (extra, H*W)
    extra = coords.shape[0]
    coords4 = jnp.broadcast_to(coords.reshape(1, extra, H, W), (B, extra, H, W))
    return jnp.concatenate([x, coords4.astype(x.dtype)], axis=1)


if __name__ == "__main__":
    key = jax.random.PRNGKey(0)
    B, C, H, W = 2, 4, 16, 16
    x = jax.random.normal(key, (B, C, H, W), dtype=jnp.float32)

    # with_r=False (module default)
    out = add_coords(x, with_r=False)
    out = jax.block_until_ready(out)
    ref = _reference(x, with_r=False)
    assert out.shape == (B, C + 2, H, W), out.shape
    assert jnp.allclose(out, ref, atol=1e-6), "mismatch (with_r=False)"

    # with_r=True path
    out_r = add_coords(x, with_r=True)
    out_r = jax.block_until_ready(out_r)
    ref_r = _reference(x, with_r=True)
    assert out_r.shape == (B, C + 3, H, W), out_r.shape
    assert jnp.allclose(out_r, ref_r, atol=1e-6), "mismatch (with_r=True)"

    # Degenerate spatial dims (H<2 / W<2 static branches)
    x_small = jax.random.normal(key, (1, 3, 1, 5), dtype=jnp.float32)
    out_small = jax.block_until_ready(add_coords(x_small, with_r=True))
    assert jnp.allclose(out_small, _reference(x_small, with_r=True), atol=1e-6)

    # Empty-tensor fast path
    x_empty = jnp.zeros((0, C, H, W), jnp.float32)
    out_empty = add_coords(x_empty, with_r=False)
    assert out_empty.shape == (0, C + 2, H, W)

    print("KERNEL_OK")
</pallas_src>

<mosaic_0001>
module attributes {stable_mosaic.version = 11 : i64} {
  func.func @_addcoords_kernel(%arg0: i32, %arg1: i32, %arg2: memref<1x4x256xf32, #tpu.memory_space<vmem>>, %arg3: memref<2x256xf32, #tpu.memory_space<vmem>>, %arg4: memref<1x6x256xf32, #tpu.memory_space<vmem>>) attributes {dimension_semantics = [#tpu.dimension_semantics<parallel>, #tpu.dimension_semantics<parallel>], iteration_bounds = array<i64: 2, 1>, scalar_prefetch = 0 : i64, scratch_operands = 0 : i64, tpu.core_type = #tpu.core_type<tc>, window_params = [{transform_indices = @transform_0, window_bounds = array<i64: 1, 4, 256>}, {transform_indices = @transform_1, window_bounds = array<i64: 2, 256>}, {transform_indices = @transform_2, window_bounds = array<i64: 1, 6, 256>}]} {
    %c0 = arith.constant 0 : index
    %c0_0 = arith.constant 0 : index
    %c0_1 = arith.constant 0 : index
    %0 = vector.load %arg2[%c0, %c0_0, %c0_1] : memref<1x4x256xf32, #tpu.memory_space<vmem>>, vector<1x4x256xf32>
    %1 = vector.shape_cast %0 : vector<1x4x256xf32> to vector<4x256xf32>
    %c0_2 = arith.constant 0 : index
    %c0_3 = arith.constant 0 : index
    %c0_4 = arith.constant 0 : index
    %2 = vector.load %arg4[%c0_2, %c0_3, %c0_4] : memref<1x6x256xf32, #tpu.memory_space<vmem>>, vector<1x4x256xf32>
    %3 = vector.shape_cast %2 : vector<1x4x256xf32> to vector<4x256xf32>
    %4 = vector.shape_cast %1 : vector<4x256xf32> to vector<1x4x256xf32>
    tpu.vector_store %arg4[%c0_2, %c0_3, %c0_4], %4 {strides = array<i32>} : memref<1x6x256xf32, #tpu.memory_space<vmem>>, vector<1x4x256xf32>,
    %c0_5 = arith.constant 0 : index
    %c0_6 = arith.constant 0 : index
    %5 = vector.load %arg3[%c0_5, %c0_6] : memref<2x256xf32, #tpu.memory_space<vmem>>, vector<2x256xf32>
    %c0_7 = arith.constant 0 : index
    %c4 = arith.constant 4 : index
    %c0_8 = arith.constant 0 : index
    %6 = vector.load %arg4[%c0_7, %c4, %c0_8] : memref<1x6x256xf32, #tpu.memory_space<vmem>>, vector<1x2x256xf32>
    %7 = vector.shape_cast %6 : vector<1x2x256xf32> to vector<2x256xf32>
    %8 = vector.shape_cast %5 : vector<2x256xf32> to vector<1x2x256xf32>
    tpu.vector_store %arg4[%c0_7, %c4, %c0_8], %8 {strides = array<i32>} : memref<1x6x256xf32, #tpu.memory_space<vmem>>, vector<1x2x256xf32>,
    return
  }
  func.func @transform_0(%arg0: i32, %arg1: i32) -> (i32, i32, i32) {
    %c0_i32 = arith.constant 0 : i32
    %c0_i32_0 = arith.constant 0 : i32
    return %arg0, %c0_i32, %arg1 : i32, i32, i32
  }
  func.func @transform_1(%arg0: i32, %arg1: i32) -> (i32, i32) {
    %c0_i32 = arith.constant 0 : i32
    %c0_i32_0 = arith.constant 0 : i32
    return %c0_i32, %arg1 : i32, i32
  }
  func.func @transform_2(%arg0: i32, %arg1: i32) -> (i32, i32, i32) {
    %c0_i32 = arith.constant 0 : i32
    %c0_i32_0 = arith.constant 0 : i32
    return %arg0, %c0_i32, %arg1 : i32, i32, i32
  }
}

</mosaic_0001>

<bundles_post_ra>
// kernel: tpu_custom_call.1
= control target key start
LH: loop header
LB: loop body
LE: loop exit
PB: predicated region body
PF: predicated region fallthrough
CT: control target
= control target key end

     0   :  { %7 = vsyncpa [#allocation3], 0  ;;  %s718_s0 = inlined_call_operand.hbm [shape: f32[2,4,256], index: 0, kind: input, shape index: {}]   ;;  %s719_s1 = inlined_call_operand.hbm [shape: f32[2,256], index: 1, kind: input, shape index: {}]   ;;  %s720_s2 = inlined_call_operand.vmem [shape: f32[2,6,256], index: 2, kind: output, shape index: {}]  }
   0x1   :  { %9 = vsyncpa [#allocation3 + $0x1], 0 }
   0x2   :  { %10 = vsyncpa [#allocation5], 0  ;;  %s555_s9 = smov 0   ;;  %s557_s10 = smov 0  }
   0x3   :  { %s559_s11 = smov 0   ;;  %s561_s12 = smov 0  }
   0x4   :  { %s563_s13 = smov 0   ;;  %s565_s14 = smov 0  }
   0x5 LB: > { %s339_s15 = sadd.s32 4294967295, %s536_s14   ;;  %p50_p0 = scmp.ne.s32.totalorder %s520_s10, %s516_s9  ;;  %s536_s14 = sphi %s565_s14, %s16_s14   ;;  %s532_s13 = sphi %s563_s13, %s739_s13   ;;  %s528_s12 = sphi %s561_s12, %s738_s12   ;;  %s524_s11 = sphi %s559_s11, %s737_s11   ;;  %s520_s10 = sphi %s557_s10, %s736_s10   ;;  %s516_s9 = sphi %s555_s9, %s735_s9  }
   0x6   : > { %p585_p1 = scmp.eq.s32.totalorder %s339_s15, 0  ;;  %p341_p2 = scmp.ge.s32.totalorder %s536_s14, 1 }
   0x7   : > { %p115_p3 = scmp.lt.s32.totalorder %s536_s14, 3  ;;  %s538_s19 = smov [#allocation4]  }
   0x8   : > { %s725_s16 = scalar_select %p585_p1, 1, 0 }
   0x9   : > { %p593_p4 = por %p585_p1, %p50_p0  ;;  %p597_p5 = pnand %p341_p2, %p115_p3 }
   0xa   : > { %s131_s20 = sshll.u32 %s538_s19, 4  ;;  %s28_s22 = sadd.s32 1, %s532_s13  ;;  %s132_s20 = int_to_ptr.vmem [resolvable:$true] %s131_s20 }
   0xb   : > { %s726_s17 = scalar_select %p593_p4, 1, 0 }
   0xc   : > { %s727_s18 = scalar_select %p597_p5, 1, 0 }
   0xd   : > { %p363_p6 = pneg %p597_p5  ;;  %s37_s23 = sadd.s32 1, %s524_s11 }
   0xe   : > { %p611_p8 = scmp.ge.s32.totalorder %s28_s22, 2  ;;  %s424_s27 = scalar_lea.hbm %s719_s1, 64 }
   0xf   : > { %p605_p7 = pnand %p363_p6, %p585_p1  ;;  %p425_p9 = scmp.ne.s32.totalorder %s719_s1, %s424_s27 }
  0x10   : > { %s729_s24 = scalar_select %p611_p8, 1, 0 }
  0x11   : > { %p426_p10 = pneg %p605_p7  ;;  %p431_p13 = scmp.lt.u32.totalorder %s424_s27, %s719_s1 }
  0x13   : > { %p427_p11 = pnand %p426_p10, %p425_p9 }
  0x15   : > { %p428_p12 = pneg %p427_p11 }
  0x17   : > { %p433_p0 = pnand %p431_p13, %p428_p12 }
  0x19   : > { %436 = shalt.err (!%p433_p0)
}
  0x1a   : > { %s437_s4 = scalar_lea.vmem %s132_s20, 64  ;;  %p445_p1 = scmp.lt.s32.totalorder %s132_s20, %s132_s20 }
  0x1b   : > { %p438_p2 = scmp.ne.s32.totalorder %s132_s20, %s437_s4  ;;  %p446_p4 = scmp.lt.s32.totalorder %s437_s4, %s437_s4 }
  0x1d   : > { %p440_p3 = pnand %p438_p2, %p426_p10  ;;  %p447_p5 = por %p446_p4, %p445_p1 }
  0x1f   : > { %p441_p6 = pneg %p440_p3 }
  0x21   : > { %p448_p8 = pnand %p447_p5, %p441_p6 }
  0x23   : > { %451 = shalt.err (!%p448_p8)
}
  0x24   : > { %366 = dma.hbm_to_vmem [thread:$0]  (!%p605_p7), %s719_s1, 64, %s132_s20, [#allocation5]  }
  0x25   : > { %p730_p9 = scmp.ne.s32.totalorder %s729_s24, 0  ;;  %p44_p1 = scmp.ne.s32.totalorder %s524_s11, %s520_s10 }
  0x26   : > { %p45_p4 = scmp.eq.s32.totalorder %s536_s14, 0  ;;  %p372_p5 = scmp.lt.s32.totalorder %s536_s14, 2 }
  0x27   : > { %s741_s22 = smov (%p730_p9, %s28_s22), 0  ;;  %s142_s8 = sand.u32 1, %s524_s11  }
  0x28   : > { %s32_s7 = ssub.s32 %s532_s13, %s741_s22  ;;  %p46_p10 = por %p45_p4, %p44_p1 }
  0x29   : > { %p35_p8 = scmp.eq.s32.totalorder %s32_s7, 0  ;;  %s355_s9 = sshll.u32 %s532_s13, 7 }
  0x2a   : > { %s344_s19 = sshll.u32 %s142_s8, 3  ;;  %s651_s20 = scalar_lea.hbm %s718_s0, %s355_s9 }
  0x2b   : > { %s646_s15 = scalar_select %p35_p8, %s524_s11, %s37_s23  }
  0x2c   : > { %s146_s24 = scalar_lea.vmem [#allocation2], %s344_s19  ;;  %p653_p7 = pnand %p372_p5, %p46_p10 }
  0x2d   : > { %s156_s26 = sshll.u32 %s146_s24, 4  ;;  %s143_s23 = scalar_lea.sflag [#allocation3], %s142_s8  ;;  %s657_s26 = int_to_ptr.vmem [resolvable:$true] %s156_s26 }
  0x2e   : > { %s452_s28 = scalar_lea.hbm %s651_s20, 128  ;;  %p454_p12 = pneg %p653_p7 }
  0x2f   : > { %p453_p11 = scmp.ne.s32.totalorder %s651_s20, %s452_s28  ;;  %s457_s3 = scalar_lea.hbm %s718_s0, 256 }
  0x30   : > { %p458_p2 = scmp.lt.u32.totalorder %s651_s20, %s718_s0  ;;  %p459_p3 = scmp.lt.u32.totalorder %s457_s3, %s452_s28 }
  0x31   : > { %p455_p13 = pnand %p454_p12, %p453_p11  ;;  %p461_p9 = scmp.lt.u32.totalorder %s452_s28, %s651_s20 }
  0x32   : > { %p460_p6 = por %p459_p3, %p458_p2 }
  0x33   : > { %p456_p0 = pneg %p455_p13 }
  0x34   : > { %p462_p1 = por %p461_p9, %p460_p6 }
  0x36   : > { %p463_p4 = pnand %p462_p1, %p456_p0 }
  0x38   : > { %466 = shalt.err (!%p463_p4)
}
  0x39   : > { %s467_s6 = scalar_lea.vmem %s657_s26, 128  ;;  %s539_s7 = smov [#allocation2]  }
  0x3a   : > { %p468_p5 = scmp.ne.s32.totalorder %s657_s26, %s467_s6  ;;  %s472_s8 = sshll.u32 %s539_s7, 4  ;;  %s473_s8 = int_to_ptr.vmem [resolvable:$false] %s472_s8 }
  0x3b   : > { %s474_s9 = scalar_lea.vmem %s473_s8, 256  ;;  %p475_p11 = scmp.lt.s32.totalorder %s657_s26, %s473_s8 }
  0x3c   : > { %p470_p8 = pnand %p468_p5, %p454_p12  ;;  %p476_p13 = scmp.lt.s32.totalorder %s474_s9, %s467_s6 }
  0x3e   : > { %p471_p10 = pneg %p470_p8  ;;  %p477_p2 = por %p476_p13, %p475_p11 }
  0x40   : > { %p478_p3 = pnand %p477_p2, %p471_p10 }
  0x42   : > { %481 = shalt.err (!%p478_p3)
}
  0x43   : > { %370 = dma.hbm_to_vmem [thread:$0]  (!%p653_p7), %s651_s20, 128, %s657_s26, %s143_s23  }
  0x44   : > { %p732_p0 = scmp.ne.s32.totalorder %s727_s18, 0 }
  0x45   : > { %s167_s19 = sand.u32 (!%p732_p0), 1, %s520_s10   ;;  %p733_p12 = scmp.ne.s32.totalorder (!%p732_p0), %s726_s17, 0 }
  0x46   : > { %165 = sbr.rel (%p732_p0) target bundleno = 88 (0x58), region = 28  ;;  %s348_s21 = sshll.u32 (!%p732_p0), %s167_s19, 3 }
  0x47   : > { %s168_s25 = scalar_lea.sflag (!%p732_p0), [#allocation3], %s167_s19  ;;  %s171_s24 = scalar_lea.vmem (!%p732_p0), [#allocation2], %s348_s21 }
  0x4d   : > { %507 = dma.done.wait (%p733_p12), %s168_s25, 128  }
  0x4e   : > { %509 = vsyncadd (%p733_p12), %s168_s25, 4294967168  ;;  %p734_p6 = scmp.ne.s32.totalorder %s725_s16, 0 }
  0x50   : > { %511 = dma.done.wait (%p734_p6), [#allocation5], 64  }
  0x51   : > { %513 = vsyncadd (%p734_p6), [#allocation5], 4294967232  ;;  %p203_p7 = scmp.lt.s32.totalorder %s528_s12, 1  ;;  %v212_v0 = vld [vmem:[%s171_s24] sm:$0xff] }
  0x52   : > { %v352_v1 = vld.sshfl [vmem:[#allocation4] sm:$0x33 pattern:$0x76325410]  ;;  %v214_v2 = vcombine.high %v212_v0, %v212_v0 }
  0x53   : > { %s743_s12 = smov (!%p203_p7, %s528_s12), 1  ;;  %v227_v3 = vcombine.low %v352_v1, %v352_v1 }
  0x54   : > { %s356_s18 = sshll.u32 %s743_s12, 4 }
  0x55   : > { %s210_s27 = scalar_lea.vmem %s720_s2, %s356_s18 }
  0x56   : > { %216 = vst [vmem:[%s210_s27] sm:$0xf] %v212_v0  ;;  %231 = vst [vmem:[%s210_s27 + $0x8] sm:$0x30] %v352_v1 }
  0x57   : > { %217 = vst [vmem:[%s210_s27 + $0x8] sm:$0xf] %v214_v2  ;;  %230 = vst [vmem:[%s210_s27] sm:$0x30] %v227_v3 }
  0x58 PF: > { %s16_s14 = sadd.s32 1, %s536_s14   ;;  %s735_s9 = smov %s520_s10 }
  0x59   : > { %p13_p9 = scmp.ge.s32.totalorder %s16_s14, 4   ;;  %s736_s10 = smov %s524_s11 }
  0x5a   : > { %s737_s11 = smov %s646_s15  ;;  %s738_s12 = smov %s532_s13 }
  0x5b   : > { %s739_s13 = smov %s741_s22  ;;  %15 = sbr.rel (!%p13_p9) target bundleno = 5 (0x5), region = 73 }
  0x62   :  { %262 = vsyncpa [#allocation3], 1 }
  0x63   :  { %264 = vsyncpa [#allocation3 + $0x1], 1 }
  0x64   :  { %265 = vsyncpa [#allocation5], 1 }

</bundles_post_ra>
